<compile_context>
chip_gen: v6e
topology: v6e:2x2x1
jax: 0.10.0
libtpu: 0.0.40
codegen_flags: <defaults>
</compile_context>

<pallas_src>
import jax
import jax.numpy as jnp
from jax import lax
from jax.experimental import pallas as pl
from jax.experimental.pallas import tpu as pltpu

INPUT_SIZE = 3
HIDDEN_SIZE = 4
OUTPUT_SIZE = 2


def _round_up(n, m):
    return ((n + m - 1) // m) * m


def two_layer_net_kernel(x_ref, w1_ref, w2_ref, o_ref):
    # x_ref:  (TM, INPUT_SIZE)           f32  streamed batch tile
    # w1_ref: (HIDDEN_SIZE, INPUT_SIZE)  f32  fc1.weight (PyTorch layout, resident)
    # w2_ref: (OUTPUT_SIZE, HIDDEN_SIZE) f32  fc2.weight (PyTorch layout, resident)
    # o_ref:  (TM, OUTPUT_SIZE)          f32  softmax probabilities
    x = x_ref[...]

    # fc1 (bias=False) + ReLU: x @ w1.T via dot_general (no transposed weight copy).
    h = lax.dot_general(x, w1_ref[...], (((1,), (1,)), ((), ())),
                        preferred_element_type=jnp.float32)
    h = jnp.maximum(h, 0.0)

    # fc2 (bias=False): h @ w2.T -> (TM, OUTPUT_SIZE).
    logits = lax.dot_general(h, w2_ref[...], (((1,), (1,)), ((), ())),
                             preferred_element_type=jnp.float32)

    # Numerically stable softmax over dim=1 (only OUTPUT_SIZE columns; exact divide).
    m = jnp.max(logits, axis=-1, keepdims=True)
    e = jnp.exp(logits - m)
    denom = jnp.sum(e, axis=-1, keepdims=True)
    o_ref[...] = e / denom


def two_layer_net(x, w1, w2, *, tm=2048):
    """x: (B, INPUT_SIZE); w1: (HIDDEN, INPUT); w2: (OUTPUT, HIDDEN). Returns (B, OUTPUT)."""
    B = x.shape[0]
    # Batch tile: multiple of 8 (f32 sublane); capped at ~ceil(B/2) so moderate
    # batches still yield >= 2 grid steps (keeps both v7x TCs busy). Per-tile VMEM
    # is tiny with the narrow output, so large tm just amortizes per-step overhead.
    TM = max(8, min(tm, _round_up(pl.cdiv(B, 2), 8)))
    grid = (pl.cdiv(B, TM),)  # no wrapper padding; Mosaic masks the edge block

    out = pl.pallas_call(
        two_layer_net_kernel,
        out_shape=jax.ShapeDtypeStruct((B, OUTPUT_SIZE), jnp.float32),
        grid_spec=pl.GridSpec(
            grid=grid,
            in_specs=[
                pl.BlockSpec((TM, INPUT_SIZE), lambda i: (i, 0)),            # streamed
                pl.BlockSpec((HIDDEN_SIZE, INPUT_SIZE), lambda i: (0, 0)),   # resident
                pl.BlockSpec((OUTPUT_SIZE, HIDDEN_SIZE), lambda i: (0, 0)),  # resident
            ],
            out_specs=pl.BlockSpec((TM, OUTPUT_SIZE), lambda i: (i, 0)),
        ),
        compiler_params=pltpu.CompilerParams(
            dimension_semantics=("parallel",),   # shard batch tiles across TCs (v7x)
            vmem_limit_bytes=48 * 1024 * 1024,   # safe on v7x (64 MiB/TC), roomy on v5e/v6e
        ),
    )(x, w1, w2)
    return out


def _ref_forward(x, w1, w2):
    return jax.nn.softmax(jnp.maximum(x @ w1.T, 0.0) @ w2.T, axis=1)


if __name__ == "__main__":
    # Inputs from the PyTorch script: x = stack([[1,2,3],[4,5,6]]).
    x = jnp.array([[1.0, 2.0, 3.0],
                   [4.0, 5.0, 6.0]], dtype=jnp.float32)

    # Deterministic parameter init (PyTorch Linear shapes: (out_features, in_features)).
    key = jax.random.PRNGKey(0)
    k1, k2, k3 = jax.random.split(key, 3)
    bound1 = 1.0 / (INPUT_SIZE ** 0.5)
    bound2 = 1.0 / (HIDDEN_SIZE ** 0.5)
    w1 = jax.random.uniform(k1, (HIDDEN_SIZE, INPUT_SIZE), jnp.float32,
                            minval=-bound1, maxval=bound1)
    w2 = jax.random.uniform(k2, (OUTPUT_SIZE, HIDDEN_SIZE), jnp.float32,
                            minval=-bound2, maxval=bound2)

    # Case 1: the exact PyTorch example (B=2, single partial tile).
    out = jax.block_until_ready(two_layer_net(x, w1, w2))
    ref = _ref_forward(x, w1, w2)
    assert out.shape == (2, OUTPUT_SIZE)
    assert jnp.allclose(out, ref, atol=1e-5, rtol=1e-5), (out, ref)

    # Case 2: larger, non-tile-aligned batch to exercise the cdiv grid
    # (multi-tile, masked edge block) without any wrapper-side padding.
    xb = jax.random.normal(k3, (300, INPUT_SIZE), jnp.float32)
    out_b = jax.block_until_ready(two_layer_net(xb, w1, w2))
    ref_b = _ref_forward(xb, w1, w2)
    assert out_b.shape == (300, OUTPUT_SIZE)
    assert jnp.allclose(out_b, ref_b, atol=1e-5, rtol=1e-5)

    print("KERNEL_OK")
</pallas_src>

<mosaic_0001>
module attributes {stable_mosaic.version = 11 : i64} {
  func.func @two_layer_net_kernel(%arg0: i32, %arg1: memref<8x3xf32, #tpu.memory_space<vmem>>, %arg2: memref<4x3xf32, #tpu.memory_space<vmem>>, %arg3: memref<2x4xf32, #tpu.memory_space<vmem>>, %arg4: memref<8x2xf32, #tpu.memory_space<vmem>>) attributes {dimension_semantics = [#tpu.dimension_semantics<parallel>], iteration_bounds = array<i64: 1>, scalar_prefetch = 0 : i64, scratch_operands = 0 : i64, tpu.core_type = #tpu.core_type<tc>, window_params = [{transform_indices = @transform_0, window_bounds = array<i64: 8, 3>}, {pipeline_mode = #tpu.pipeline_mode<synchronous>, transform_indices = @transform_1, window_bounds = array<i64: 4, 3>}, {pipeline_mode = #tpu.pipeline_mode<synchronous>, transform_indices = @transform_2, window_bounds = array<i64: 2, 4>}, {transform_indices = @transform_3, window_bounds = array<i64: 8, 2>}]} {
    %c0 = arith.constant 0 : index
    %c0_0 = arith.constant 0 : index
    %0 = vector.load %arg1[%c0, %c0_0] : memref<8x3xf32, #tpu.memory_space<vmem>>, vector<8x3xf32>
    %c0_1 = arith.constant 0 : index
    %c0_2 = arith.constant 0 : index
    %1 = vector.load %arg2[%c0_1, %c0_2] : memref<4x3xf32, #tpu.memory_space<vmem>>, vector<4x3xf32>
    %cst = arith.constant dense<0.000000e+00> : vector<8x4xf32>
    %2 = tpu.matmul %0, %1, %cst {dimension_numbers = #tpu.dot_dimension_numbers<[1], [1], [0], [0], [0, 0, 1, 0], [], []>} : vector<8x3xf32>, vector<4x3xf32>, vector<8x4xf32> -> vector<8x4xf32>
    %cst_3 = arith.constant 0.000000e+00 : f32
    %3 = vector.broadcast %cst_3 : f32 to vector<8x4xf32>
    %4 = arith.maximumf %2, %3 : vector<8x4xf32>
    %c0_4 = arith.constant 0 : index
    %c0_5 = arith.constant 0 : index
    %5 = vector.load %arg3[%c0_4, %c0_5] : memref<2x4xf32, #tpu.memory_space<vmem>>, vector<2x4xf32>
    %cst_6 = arith.constant dense<0.000000e+00> : vector<8x2xf32>
    %6 = tpu.matmul %4, %5, %cst_6 {dimension_numbers = #tpu.dot_dimension_numbers<[1], [1], [0], [0], [0, 0, 1, 0], [], []>} : vector<8x4xf32>, vector<2x4xf32>, vector<8x2xf32> -> vector<8x2xf32>
    %cst_7 = arith.constant dense<0xFF800000> : vector<8xf32>
    %7 = vector.multi_reduction <maximumf>, %6, %cst_7 [1] : vector<8x2xf32> to vector<8xf32>
    %8 = vector.shape_cast %7 : vector<8xf32> to vector<8x1xf32>
    %9 = vector.broadcast %8 : vector<8x1xf32> to vector<8x2xf32>
    %10 = arith.subf %6, %9 : vector<8x2xf32>
    %11 = math.exp %10 : vector<8x2xf32>
    %cst_8 = arith.constant dense<0.000000e+00> : vector<8xf32>
    %12 = vector.multi_reduction <add>, %11, %cst_8 [1] : vector<8x2xf32> to vector<8xf32>
    %13 = vector.shape_cast %12 : vector<8xf32> to vector<8x1xf32>
    %14 = vector.broadcast %13 : vector<8x1xf32> to vector<8x2xf32>
    %15 = arith.divf %11, %14 : vector<8x2xf32>
    %c0_9 = arith.constant 0 : index
    %c0_10 = arith.constant 0 : index
    %16 = vector.load %arg4[%c0_9, %c0_10] : memref<8x2xf32, #tpu.memory_space<vmem>>, vector<8x2xf32>
    tpu.vector_store %arg4[%c0_9, %c0_10], %15 {strides = array<i32>} : memref<8x2xf32, #tpu.memory_space<vmem>>, vector<8x2xf32>,
    return
  }
  func.func @transform_0(%arg0: i32) -> (i32, i32) {
    %c0_i32 = arith.constant 0 : i32
    %c0_i32_0 = arith.constant 0 : i32
    return %arg0, %c0_i32 : i32, i32
  }
  func.func @transform_1(%arg0: i32) -> (i32, i32) {
    %c0_i32 = arith.constant 0 : i32
    %c0_i32_0 = arith.constant 0 : i32
    %c0_i32_1 = arith.constant 0 : i32
    return %c0_i32, %c0_i32_0 : i32, i32
  }
  func.func @transform_2(%arg0: i32) -> (i32, i32) {
    %c0_i32 = arith.constant 0 : i32
    %c0_i32_0 = arith.constant 0 : i32
    %c0_i32_1 = arith.constant 0 : i32
    return %c0_i32, %c0_i32_0 : i32, i32
  }
  func.func @transform_3(%arg0: i32) -> (i32, i32) {
    %c0_i32 = arith.constant 0 : i32
    %c0_i32_0 = arith.constant 0 : i32
    return %arg0, %c0_i32 : i32, i32
  }
}

</mosaic_0001>

<bundles_post_ra>
// kernel: tpu_custom_call.1
= control target key start
LH: loop header
LB: loop body
LE: loop exit
PB: predicated region body
PF: predicated region fallthrough
CT: control target
= control target key end

     0   :  { %8 = vsyncpa [#allocation3], 0  ;;  %s373_s0 = inlined_call_operand.hbm [shape: f32[2,3], index: 0, kind: input, shape index: {}]   ;;  %s374_s1 = inlined_call_operand.hbm [shape: f32[4,3], index: 1, kind: input, shape index: {}]   ;;  %s375_s2 = inlined_call_operand.vmem [shape: f32[2,4], index: 2, kind: input, shape index: {}]   ;;  %s376_s3 = inlined_call_operand.hbm [shape: f32[2,2], index: 3, kind: output, shape index: {}]  }
   0x1   :  { %9 = vsyncpa [#allocation6], 0 }
   0x2   :  { %10 = vsyncpa [#allocation4], 0 }
   0x3   :  { %15 = vsyncadd [#allocation3], 96  ;;  %s325_s12 = smov [#allocation2]  }
   0x4   :  { %s16_s13 = sshll.u32 %s325_s12, 4  ;;  %s17_s13 = int_to_ptr.vmem [resolvable:$true] %s16_s13 }
   0x5   :  { %s267_s14 = scalar_lea.vmem %s17_s13, 32  ;;  %s271_s15 = scalar_lea.vmem %s17_s13, 128 }
   0x6   :  { %p268_p0 = scmp.ne.s32.totalorder %s17_s13, %s267_s14  ;;  %p272_p1 = scmp.lt.s32.totalorder %s17_s13, %s17_s13 }
   0x7   :  { %p273_p2 = scmp.lt.s32.totalorder %s271_s15, %s267_s14 }
   0x9   :  { %p274_p3 = por %p273_p2, %p272_p1 }
   0xb   :  { %p275_p4 = pnand %p274_p3, %p268_p0 }
   0xd   :  { %278 = shalt.err (!%p275_p4)
}
   0xe   :  { %s326_s16 = smov 32   ;;  %s327_s17 = smov 2  }
   0xf   :  { %22 = dma.hbm_to_vmem [thread:$0]  %s373_s0, 32, %s17_s13, [#allocation3], %s326_s16, %s326_s16, %s327_s17  }
  0x10   :  { %s328_s20 = smov [#allocation5]  }
  0x11   :  { %s29_s21 = sshll.u32 %s328_s20, 4  ;;  %s30_s21 = int_to_ptr.vmem [resolvable:$true] %s29_s21 }
  0x12   :  { %s287_s22 = scalar_lea.vmem %s30_s21, 64  ;;  %p292_p6 = scmp.lt.s32.totalorder %s30_s21, %s30_s21 }
  0x13   :  { %p288_p5 = scmp.ne.s32.totalorder %s30_s21, %s287_s22  ;;  %p293_p7 = scmp.lt.s32.totalorder %s287_s22, %s287_s22 }
  0x15   :  { %p294_p8 = por %p293_p7, %p292_p6 }
  0x17   :  { %p295_p9 = pnand %p294_p8, %p288_p5 }
  0x19   :  { %298 = shalt.err (!%p295_p9)
}
  0x1a   :  { %32 = dma.hbm_to_vmem [thread:$0]  %s374_s1, 64, %s30_s21, [#allocation6]  }
  0x1b   :  { %319 = dma.done.wait [#allocation3], 128  }
  0x1c   :  { %320 = vsyncadd [#allocation3], 4294967168 }
  0x1d   :  { %321 = dma.done.wait [#allocation6], 64  }
  0x1e   :  { %322 = vsyncadd [#allocation6], 4294967232  ;;  %v329_v0 = vmov 0.0   ;;  %vm330_vm0 = vmmov 0   ;;  %vm43_vm1 = vcmask 23552   ;;  %v41_v2 = vld [vmem:[#allocation2] sm:$0xff] }
  0x1f   :  { %238 = vmatprep.subr.mxu0 %v329_v0  ;;  %240 = vmatprep.mubr.msk.f32.mxu0 %vm330_vm0, %v329_v0  ;;  %v42_v1 = vld [vmem:[#allocation5] sm:$0xf]  ;;  %v121_v3 = vld [vmem:[%s375_s2] sm:$0x3]  ;;  %vm122_vm2 = vcmask 31744   ;;  %vm199_vm3 = vcmask 15360  }
  0x20   :  { %243 = vmatprep.subr.mxu1 %v329_v0  ;;  %245 = vmatprep.mubr.msk.f32.mxu1 %vm330_vm0, %v329_v0 }
  0x21   :  { %239 = vmatpush3.xpose.msk.msra.mxu0 %vm43_vm1, %v42_v1  ;;  %244 = vmatpush3.xpose.msk.msra.mxu1 %vm122_vm2, %v121_v3 }
  0x24   :  { %241 = vmatmul.mubr.msk.f32.vlgmr.msra.gmra.mxu0 %vm43_vm1, %v41_v2 }
  0xe4   :  { %v116_v4 = vpop.f32.mrf.mxu0 }
  0xe5   :  { %v120_v5 = vmax.f32 %v116_v4, 0.0 }
  0xe6   :  { %v242_v6 = vpop.f32.mrf.mxu0 }
  0xe7   :  { %246 = vmatmul.mubr.msk.f32.vlgmr.msra.gmra.mxu1 %vm122_vm2, %v120_v5 }
 0x1a7   :  { %v195_v7 = vpop.f32.mrf.mxu1 }
 0x1a8   :  { %v200_v8 = vsel %vm199_vm3, %v195_v7, -inf }
 0x1a9   :  { %201 = vmax.xlane.f32.xlu0 %v200_v8  ;;  %v247_v9 = vpop.f32.mrf.mxu1 }
 0x232   :  { %v202_v10 = vpop.xlane.xlu0 %201 }
 0x233   :  { %v203_v11 = vsub.f32 %v195_v7, %v202_v10 }
 0x235   :  { %v204_v12 = vmul.f32 1.442695, %v203_v11 }
 0x237   :  { %255 = vpow2.f32 %v204_v12 }
 0x244   :  { %v256_v13 = vpop.eup %255 }
 0x245   :  { %v206_v14 = vsel %vm199_vm3, %v256_v13, 0.0 }
 0x246   :  { %207 = vadd.xlane.f32.xlu0 %v206_v14 }
 0x2cf   :  { %v208_v15 = vpop.xlane.xlu0 %207 }
 0x2d0   :  { %257 = vrcp.f32 %v208_v15 }
 0x2dd   :  { %v258_v16 = vpop.eup %257 }
 0x2de   :  { %v210_v17 = vmul.f32 %v258_v16, %v256_v13 }
 0x2e0   :  { %211 = vst.msk [vmem:[#allocation7] sm:$0xff] %vm199_vm3, %v210_v17 }
 0x2e1   :  { %216 = vsyncadd [#allocation4], 96  ;;  %s331_s1 = smov [#allocation7]  }
 0x2e2   :  { %s217_s2 = sshll.u32 %s331_s1, 4  ;;  %s218_s2 = int_to_ptr.vmem [resolvable:$true] %s217_s2 }
 0x2e3   :  { %s299_s26 = scalar_lea.vmem %s218_s2, 32  ;;  %s303_s27 = scalar_lea.vmem %s218_s2, 128 }
 0x2e4   :  { %p300_p10 = scmp.ne.s32.totalorder %s218_s2, %s299_s26  ;;  %p304_p11 = scmp.lt.s32.totalorder %s218_s2, %s218_s2 }
 0x2e5   :  { %p305_p12 = scmp.lt.s32.totalorder %s303_s27, %s299_s26 }
 0x2e7   :  { %p306_p13 = por %p305_p12, %p304_p11 }
 0x2e9   :  { %p307_p0 = pnand %p306_p13, %p300_p10 }
 0x2eb   :  { %310 = shalt.err (!%p307_p0)
}
 0x2ec   :  { %223 = dma.vmem_to_hbm [thread:$0]  %s218_s2, 32, %s376_s3, [#allocation4], %s326_s16, %s326_s16, %s327_s17  }
 0x2ed   :  { %323 = dma.done.wait [#allocation4], 128  }
 0x2ee   :  { %324 = vsyncadd [#allocation4], 4294967168 }
 0x2ef   :  { %227 = vsyncpa [#allocation3], 1 }
 0x2f0   :  { %228 = vsyncpa [#allocation6], 1 }
 0x2f1   :  { %229 = vsyncpa [#allocation4], 1 }

</bundles_post_ra>
